<compile_context>
chip_gen: v7x
topology: tpu7x:2x2x1
jax: 0.10.0
libtpu: 0.0.40
codegen_flags: <defaults>
</compile_context>

<pallas_src>
import functools

import jax
import jax.numpy as jnp
from jax.experimental import pallas as pl
from jax.experimental.pallas import tpu as pltpu  # noqa: F401  (TPU backend)

NDIMS = 2
NZ = 200
NQUERY = 8


# ----------------------------- Pallas kernel --------------------------------
def _stdf_kernel(d_ref, mT_ref, out_ref, *, scale):
    # d_ref : (nquery, ndims)   mT_ref : (ndims, nmix_pad)   out_ref: (nquery,1)
    ndims = d_ref.shape[1]
    # acc[i, j] = max_k d[i, k] * M[j, k]   -- ndims is tiny (2), static unroll.
    acc = d_ref[:, 0:1] * mT_ref[0:1, :]                      # (nquery, nmix_pad)
    for k in range(1, ndims):
        acc = jnp.maximum(acc, d_ref[:, k:k + 1] * mT_ref[k:k + 1, :])
    # mean over the (true) mix axis, folded with the ndims factor into `scale`
    # (a Python float -> single VPU multiply; padded lanes contribute 0).
    out_ref[...] = jnp.sum(acc, axis=1, keepdims=True) * scale


def prepare_M(M):
    """One-time setup: f32 cast, transpose, lane-pad nmix to a multiple of 128.

    Returns (mT_padded: (ndims, nmix_pad) f32, nmix_true).
    Call this at __init__ / resample time, NOT per forward.
    """
    M = jnp.asarray(M, jnp.float32)
    nmix, _ = M.shape
    nmix_pad = ((nmix + 127) // 128) * 128
    mT = M.T                                                   # (ndims, nmix)
    if nmix_pad != nmix:
        mT = jnp.pad(mT, ((0, 0), (0, nmix_pad - nmix)))       # zero lanes
    return mT, nmix


def stdf_forward(d, mT_padded, nmix_true):
    """d: (nquery, ndims) f32, mT_padded: (ndims, nmix_pad) f32 -> (nquery,)."""
    d = jnp.asarray(d, jnp.float32)
    nquery, ndims = d.shape
    nmix_pad = mT_padded.shape[1]
    scale = float(ndims) / float(nmix_true)                    # folded constant

    kernel = functools.partial(_stdf_kernel, scale=scale)
    cost = pl.CostEstimate(
        flops=3 * nquery * nmix_pad,                           # 2 mul + 1 max (+reduce)
        transcendentals=0,
        bytes_accessed=4 * (nquery * ndims + ndims * nmix_pad + nquery),
    )

    out = pl.pallas_call(
        kernel,
        out_shape=jax.ShapeDtypeStruct((nquery, 1), jnp.float32),
        grid=(1,),
        in_specs=[
            pl.BlockSpec((nquery, ndims), lambda i: (0, 0)),
            pl.BlockSpec((ndims, nmix_pad), lambda i: (0, 0)),
        ],
        out_specs=pl.BlockSpec((nquery, 1), lambda i: (0, 0)),
        cost_estimate=cost,
    )(d, mT_padded)
    return out[:, 0]


# -------------------- parameter setup / M generation (glue) -----------------
def init_linear(key, in_f, out_f):
    k1, k2 = jax.random.split(key)
    bound = 1.0 / (in_f ** 0.5)
    W = jax.random.uniform(k1, (out_f, in_f), minval=-bound, maxval=bound,
                           dtype=jnp.float32)
    b = jax.random.uniform(k2, (out_f,), minval=-bound, maxval=bound,
                           dtype=jnp.float32)
    return W, b


def batchnorm_train(x, eps=1e-5):
    # BatchNorm1d in training mode, default gamma=1 / beta=0, biased variance.
    mu = jnp.mean(x, axis=0, keepdims=True)
    var = jnp.var(x, axis=0, keepdims=True)
    return (x - mu) / jnp.sqrt(var + eps)


def sample_M(key, N, ndims, params):
    (W1, b1), (W2, b2), (W3, b3) = params
    x = jax.random.uniform(key, (N, ndims), dtype=jnp.float32)  # torch.rand
    h = jax.nn.relu(batchnorm_train(x @ W1.T + b1))
    h = jax.nn.relu(batchnorm_train(h @ W2.T + b2))
    h = h @ W3.T + b3
    return jax.nn.softmax(h, axis=-1)                           # nn.Softmax()


# ----------------------------------- main ------------------------------------
if __name__ == "__main__":
    root = jax.random.PRNGKey(0)
    k_p1, k_p2, k_p3, k_m, k_d = jax.random.split(root, 5)

    params = (
        init_linear(k_p1, NDIMS, 30),
        init_linear(k_p2, 30, 30),
        init_linear(k_p3, 30, NDIMS),
    )
    M = sample_M(k_m, NZ, NDIMS, params)                        # (NZ, NDIMS)
    d = jax.random.uniform(k_d, (NQUERY, NDIMS), dtype=jnp.float32)

    # One-time M preparation (transpose + cast + lane-pad), hoisted out of
    # the forward path.
    mT_padded, nmix_true = prepare_M(M)
    mT_padded = jax.block_until_ready(mT_padded)

    out = stdf_forward(d, mT_padded, nmix_true)
    out = jax.block_until_ready(out)

    # pure-JAX reference of the PyTorch forward
    ref = NDIMS * jnp.mean(jnp.max(d[:, None, :] * M[None, :, :], axis=2),
                           axis=1)
    assert out.shape == (NQUERY,)
    assert jnp.allclose(out, ref, atol=1e-5, rtol=1e-5)

    print("KERNEL_OK")
</pallas_src>

<mosaic_0001>
module attributes {stable_mosaic.version = 11 : i64} {
  func.func @_stdf_kernel(%arg0: i32, %arg1: memref<8x2xf32, #tpu.memory_space<vmem>>, %arg2: memref<2x256xf32, #tpu.memory_space<vmem>>, %arg3: memref<8x1xf32, #tpu.memory_space<vmem>>) attributes {dimension_semantics = [#tpu.dimension_semantics<arbitrary>], iteration_bounds = array<i64: 1>, scalar_prefetch = 0 : i64, scratch_operands = 0 : i64, tpu.core_type = #tpu.core_type<tc>, window_params = [{pipeline_mode = #tpu.pipeline_mode<synchronous>, transform_indices = @transform_0, window_bounds = array<i64: 8, 2>}, {pipeline_mode = #tpu.pipeline_mode<synchronous>, transform_indices = @transform_1, window_bounds = array<i64: 2, 256>}, {pipeline_mode = #tpu.pipeline_mode<synchronous>, transform_indices = @transform_2, window_bounds = array<i64: 8, 1>}]} {
    %c0 = arith.constant 0 : index
    %c0_0 = arith.constant 0 : index
    %0 = vector.load %arg1[%c0, %c0_0] : memref<8x2xf32, #tpu.memory_space<vmem>>, vector<8x1xf32>
    %c0_1 = arith.constant 0 : index
    %c0_2 = arith.constant 0 : index
    %1 = vector.load %arg2[%c0_1, %c0_2] : memref<2x256xf32, #tpu.memory_space<vmem>>, vector<1x256xf32>
    %2 = vector.broadcast %0 : vector<8x1xf32> to vector<8x256xf32>
    %3 = vector.broadcast %1 : vector<1x256xf32> to vector<8x256xf32>
    %4 = arith.mulf %2, %3 : vector<8x256xf32>
    %c0_3 = arith.constant 0 : index
    %c1 = arith.constant 1 : index
    %5 = vector.load %arg1[%c0_3, %c1] : memref<8x2xf32, #tpu.memory_space<vmem>>, vector<8x1xf32>
    %c1_4 = arith.constant 1 : index
    %c0_5 = arith.constant 0 : index
    %6 = vector.load %arg2[%c1_4, %c0_5] : memref<2x256xf32, #tpu.memory_space<vmem>>, vector<1x256xf32>
    %7 = vector.broadcast %5 : vector<8x1xf32> to vector<8x256xf32>
    %8 = vector.broadcast %6 : vector<1x256xf32> to vector<8x256xf32>
    %9 = arith.mulf %7, %8 : vector<8x256xf32>
    %10 = arith.maximumf %4, %9 : vector<8x256xf32>
    %cst = arith.constant dense<0.000000e+00> : vector<8xf32>
    %11 = vector.multi_reduction <add>, %10, %cst [1] : vector<8x256xf32> to vector<8xf32>
    %12 = vector.shape_cast %11 : vector<8xf32> to vector<8x1xf32>
    %cst_6 = arith.constant 0.00999999977 : f32
    %13 = vector.broadcast %cst_6 : f32 to vector<8x1xf32>
    %14 = arith.mulf %12, %13 : vector<8x1xf32>
    %c0_7 = arith.constant 0 : index
    %c0_8 = arith.constant 0 : index
    %15 = vector.load %arg3[%c0_7, %c0_8] : memref<8x1xf32, #tpu.memory_space<vmem>>, vector<8x1xf32>
    tpu.vector_store %arg3[%c0_7, %c0_8], %14 {strides = array<i32>} : memref<8x1xf32, #tpu.memory_space<vmem>>, vector<8x1xf32>,
    return
  }
  func.func @transform_0(%arg0: i32) -> (i32, i32) {
    %c0_i32 = arith.constant 0 : i32
    %c0_i32_0 = arith.constant 0 : i32
    %c0_i32_1 = arith.constant 0 : i32
    return %c0_i32, %c0_i32_0 : i32, i32
  }
  func.func @transform_1(%arg0: i32) -> (i32, i32) {
    %c0_i32 = arith.constant 0 : i32
    %c0_i32_0 = arith.constant 0 : i32
    %c0_i32_1 = arith.constant 0 : i32
    return %c0_i32, %c0_i32_0 : i32, i32
  }
  func.func @transform_2(%arg0: i32) -> (i32, i32) {
    %c0_i32 = arith.constant 0 : i32
    %c0_i32_0 = arith.constant 0 : i32
    %c0_i32_1 = arith.constant 0 : i32
    return %c0_i32, %c0_i32_0 : i32, i32
  }
}

</mosaic_0001>

<bundles_post_ra>
// kernel: tpu_custom_call.1
= control target key start
LH: loop header
LB: loop body
LE: loop exit
PB: predicated region body
PF: predicated region fallthrough
CT: control target
= control target key end

     0   :  { %v67_v0 = vmov 0   ;;  %v68_v2 = vmov 1   ;;  %v19_v3 = vlaneseq  ;;  %vm56_vm0 = vcmask 7168   ;;  %s96_s0 = inlined_call_operand.vmem [shape: f32[8,2], index: 0, kind: input, shape index: {}]   ;;  %s97_s1 = inlined_call_operand.vmem [shape: f32[2,256], index: 1, kind: input, shape index: {}]   ;;  %s98_s2 = inlined_call_operand.vmem [shape: f32[8,1], index: 2, kind: output, shape index: {}]  }
   0x1   :  { %65 = vset.pattern.permute.xlu0 %v67_v0  ;;  %v11_v1 = vld [vmem:[%s96_s0] sm:$0xff] }
   0x2   :  { %15 = vperm.xlu0 %65, %v11_v1   ;;  %v20_v4 = vshrl.u32 %v19_v3, 7  ;;  %v12_v7 = vld [vmem:[%s97_s1] ss:$2 sm:$0x3] }
   0x3   :  { %v62_v8 = vld [vmem:[%s97_s1 + $0x1] ss:$2 sm:$0x3] }
   0x4   :  { %v21_v5 = vsub.s32 0, %v20_v4  ;;  %v25_v6 = vsub.s32 1, %v20_v4 }
   0x6   :  { %66 = vset.pattern.permute.xlu0 %v68_v2  ;;  %v22_v10 = vrot.slane %v12_v7, %v21_v5  ;;  %v26_v11 = vrot.slane %v12_v7, %v25_v6  ;;  %v41_v12 = vrot.slane %v62_v8, %v21_v5  ;;  %v45_v13 = vrot.slane %v62_v8, %v25_v6 }
   0x7   :  { %34 = vperm.xlu0 %66, %v11_v1  }
  0x81   :  { %v16_v9 = vpop.permute.xlu0 %15 }
  0x82   :  { %v29_v15 = vmul.f32 %v22_v10, %v16_v9  ;;  %v30_v16 = vmul.f32 %v26_v11, %v16_v9 }
  0x86   :  { %v35_v14 = vpop.permute.xlu0 %34 }
  0x87   :  { %v48_v17 = vmul.f32 %v41_v12, %v35_v14  ;;  %v49_v18 = vmul.f32 %v45_v13, %v35_v14 }
  0x89   :  { %v50_v19 = vmax.f32 %v29_v15, %v48_v17  ;;  %v51_v20 = vmax.f32 %v30_v16, %v49_v18 }
  0x8b   :  { %v52_v21 = vadd.f32 %v51_v20, %v50_v19 }
  0x8d   :  { %53 = vadd.xlane.f32.xlu1 %v52_v21 }
 0x11a   :  { %v54_v22 = vpop.xlane.xlu1 %53 }
 0x11b   :  { %v55_v23 = vmul.f32 0.01, %v54_v22 }
 0x11d   :  { %57 = vst.msk [vmem:[%s98_s2] sm:$0xff] %vm56_vm0, %v55_v23 }

</bundles_post_ra>
